<compile_context>
chip_gen: v5e
topology: v5e:2x2
jax: 0.10.0
libtpu: 0.0.40
codegen_flags: <defaults>
</compile_context>

<pallas_src>
import jax
import jax.numpy as jnp
from jax import lax
from jax.experimental import pallas as pl
from jax.experimental.pallas import tpu as pltpu

_EPS = 1e-8
_EPS2 = _EPS * _EPS


def _cosine_kernel_split(a_ref, b_ref, o_ref):
    # a_ref, b_ref: (tm, half) lane-aligned tiles of the two feature halves.
    # o_ref: (1, tm) lane-dense output tile.
    a = a_ref[...].astype(jnp.float32)
    b = b_ref[...].astype(jnp.float32)
    dot = jnp.sum(a * b, axis=1)
    na2 = jnp.sum(a * a, axis=1)
    nb2 = jnp.sum(b * b, axis=1)
    res = dot * lax.rsqrt(jnp.maximum(na2, _EPS2)) * lax.rsqrt(jnp.maximum(nb2, _EPS2))
    o_ref[...] = res[None, :].astype(o_ref.dtype)


def _cosine_kernel_fused(x_ref, o_ref):
    # x_ref: (tm, D) tile; halves sliced in-VMEM (used when D//2 is not a
    # multiple of 128, so split BlockSpecs are not lane-aligned).
    x = x_ref[...].astype(jnp.float32)
    half = x.shape[1] // 2
    a = x[:, :half]
    b = x[:, half:]
    dot = jnp.sum(a * b, axis=1)
    na2 = jnp.sum(a * a, axis=1)
    nb2 = jnp.sum(b * b, axis=1)
    res = dot * lax.rsqrt(jnp.maximum(na2, _EPS2)) * lax.rsqrt(jnp.maximum(nb2, _EPS2))
    o_ref[...] = res[None, :].astype(o_ref.dtype)


def _cdiv(a: int, b: int) -> int:
    return -(-a // b)


def _round_up(v: int, m: int) -> int:
    return ((v + m - 1) // m) * m


def _pick_tm(n: int, d: int, itemsize: int, budget_bytes: int) -> int:
    """Largest row tile whose double-buffered input windows fit the VMEM budget."""
    n8 = _round_up(n, 8)
    tm = budget_bytes // (2 * d * itemsize)       # factor 2 = double buffering
    tm = (tm // 128) * 128
    tm = max(128, min(8192, tm))
    if tm >= n8:
        return n8                                  # single tile covering all rows
    # Balance tiles across the grid (keeps >= 2 steps so the "parallel" row axis
    # can shard across v7x's two TensorCores). tm stays a multiple of 128 so the
    # (1, tm) output block is lane-aligned.
    num_tiles = _cdiv(n8, tm)
    return _round_up(_cdiv(n8, num_tiles), 128)


def cosine_distance(x: jax.Array, *, vmem_budget_bytes: int = 20 * 1024 * 1024) -> jax.Array:
    """Pallas TPU implementation of CosineDistance.forward for x of shape (N, D)."""
    n, d = x.shape
    assert d % 2 == 0, "input_size must be even"
    half = d // 2
    itemsize = jnp.dtype(x.dtype).itemsize

    tm = _pick_tm(n, d, itemsize, vmem_budget_bytes)
    num_tiles = _cdiv(n, tm)
    n_pad = num_tiles * tm

    # Explicit scoped-VMEM budget so large tiles aren't rejected by the default
    # limit; kept well under v7x's 64 MiB physical VMEM.
    needed = 2 * tm * d * itemsize + 2 * tm * 4
    vmem_limit = int(min(48 * 1024 * 1024, max(32 * 1024 * 1024, needed + 4 * 1024 * 1024)))

    compiler_params = pltpu.CompilerParams(
        dimension_semantics=("parallel",),
        vmem_limit_bytes=vmem_limit,
    )
    out_shape = jax.ShapeDtypeStruct((1, n_pad), jnp.float32)
    out_spec = pl.BlockSpec((1, tm), lambda i: (0, i))

    if half % 128 == 0:
        # Lane-aligned halves: let the DMA deliver two (tm, half) tiles directly.
        out2d = pl.pallas_call(
            _cosine_kernel_split,
            out_shape=out_shape,
            grid_spec=pltpu.PrefetchScalarGridSpec(
                num_scalar_prefetch=0,
                grid=(num_tiles,),
                in_specs=[
                    pl.BlockSpec((tm, half), lambda i: (i, 0)),
                    pl.BlockSpec((tm, half), lambda i: (i, 1)),
                ],
                out_specs=out_spec,
            ),
            compiler_params=compiler_params,
        )(x, x)
    else:
        # TODO(synk): for tiny halves (< 128 lanes) a lane-packing reshape of
        # several rows per vreg would lift VPU/load-slot utilization; for very
        # large D (> ~40K f32) add a second "arbitrary" grid axis over D with
        # (tm, 1) f32 accumulators to stay inside v7x's 64 MiB VMEM.
        out2d = pl.pallas_call(
            _cosine_kernel_fused,
            out_shape=out_shape,
            grid_spec=pltpu.PrefetchScalarGridSpec(
                num_scalar_prefetch=0,
                grid=(num_tiles,),
                in_specs=[pl.BlockSpec((tm, d), lambda i: (i, 0))],
                out_specs=out_spec,
            ),
            compiler_params=compiler_params,
        )(x)

    return out2d.reshape(-1)[:n]


def _reference(x: jax.Array) -> jax.Array:
    d = x.shape[1]
    half = d // 2
    a = x[:, :half].astype(jnp.float32)
    b = x[:, half:].astype(jnp.float32)
    dot = jnp.sum(a * b, axis=1)
    na = jnp.maximum(jnp.sqrt(jnp.sum(a * a, axis=1)), _EPS)
    nb = jnp.maximum(jnp.sqrt(jnp.sum(b * b, axis=1)), _EPS)
    return dot / (na * nb)


if __name__ == "__main__":
    key = jax.random.PRNGKey(0)
    k1, k2 = jax.random.split(key)

    # 1) Small module-like shapes (half=16 < 128 lanes -> fused in-kernel-split path).
    N1, D1 = 8, 32
    x1 = jax.random.normal(k1, (N1, D1), dtype=jnp.float32)
    out1 = jax.block_until_ready(cosine_distance(x1))
    ref1 = _reference(x1)
    assert out1.shape == (N1,)
    assert jnp.allclose(out1, ref1, atol=1e-5, rtol=1e-4), (out1, ref1)

    # 2) Lane-aligned halves + batch not a multiple of 8 (split-BlockSpec path,
    #    clamped edge block, lane-dense (1, tm) output).
    N2, D2 = 300, 256
    x2 = jax.random.normal(k2, (N2, D2), dtype=jnp.float32)
    out2 = jax.block_until_ready(cosine_distance(x2))
    ref2 = _reference(x2)
    assert out2.shape == (N2,)
    assert jnp.allclose(out2, ref2, atol=1e-5, rtol=1e-4), (out2, ref2)

    # 3) Force a multi-tile pipelined grid (tm=128, 3 steps, partial tail tile)
    #    by shrinking the VMEM budget.
    out3 = jax.block_until_ready(cosine_distance(x2, vmem_budget_bytes=300 * 1024))
    assert out3.shape == (N2,)
    assert jnp.allclose(out3, ref2, atol=1e-5, rtol=1e-4), (out3, ref2)

    print("KERNEL_OK")
</pallas_src>

<mosaic_0001>
module attributes {stable_mosaic.version = 11 : i64} {
  func.func @_cosine_kernel_fused(%arg0: i32, %arg1: memref<8x32xf32, #tpu.memory_space<vmem>>, %arg2: memref<1x8xf32, #tpu.memory_space<vmem>>) attributes {dimension_semantics = [#tpu.dimension_semantics<parallel>], iteration_bounds = array<i64: 1>, scalar_prefetch = 0 : i64, scratch_operands = 0 : i64, tpu.core_type = #tpu.core_type<tc>, window_params = [{transform_indices = @transform_0, window_bounds = array<i64: 8, 32>}, {transform_indices = @transform_1, window_bounds = array<i64: 1, 8>}]} {
    %c0 = arith.constant 0 : index
    %c0_0 = arith.constant 0 : index
    %0 = vector.load %arg1[%c0, %c0_0] : memref<8x32xf32, #tpu.memory_space<vmem>>, vector<8x32xf32>
    %1 = vector.extract_strided_slice %0 {offsets = [0, 0], sizes = [8, 16], strides = [1, 1]} : vector<8x32xf32> to vector<8x16xf32>
    %2 = vector.extract_strided_slice %0 {offsets = [0, 16], sizes = [8, 16], strides = [1, 1]} : vector<8x32xf32> to vector<8x16xf32>
    %3 = arith.mulf %1, %2 : vector<8x16xf32>
    %cst = arith.constant dense<0.000000e+00> : vector<8xf32>
    %4 = vector.multi_reduction <add>, %3, %cst [1] : vector<8x16xf32> to vector<8xf32>
    %5 = arith.mulf %1, %1 : vector<8x16xf32>
    %cst_1 = arith.constant dense<0.000000e+00> : vector<8xf32>
    %6 = vector.multi_reduction <add>, %5, %cst_1 [1] : vector<8x16xf32> to vector<8xf32>
    %7 = arith.mulf %2, %2 : vector<8x16xf32>
    %cst_2 = arith.constant dense<0.000000e+00> : vector<8xf32>
    %8 = vector.multi_reduction <add>, %7, %cst_2 [1] : vector<8x16xf32> to vector<8xf32>
    %cst_3 = arith.constant 1.000000e-16 : f32
    %9 = vector.broadcast %cst_3 : f32 to vector<8xf32>
    %10 = arith.maximumf %6, %9 : vector<8xf32>
    %11 = math.rsqrt %10 : vector<8xf32>
    %12 = arith.mulf %4, %11 : vector<8xf32>
    %cst_4 = arith.constant 1.000000e-16 : f32
    %13 = vector.broadcast %cst_4 : f32 to vector<8xf32>
    %14 = arith.maximumf %8, %13 : vector<8xf32>
    %15 = math.rsqrt %14 : vector<8xf32>
    %16 = arith.mulf %12, %15 : vector<8xf32>
    %17 = vector.shape_cast %16 : vector<8xf32> to vector<1x8xf32>
    %c0_5 = arith.constant 0 : index
    %c0_6 = arith.constant 0 : index
    %18 = vector.load %arg2[%c0_5, %c0_6] : memref<1x8xf32, #tpu.memory_space<vmem>>, vector<1x8xf32>
    tpu.vector_store %arg2[%c0_5, %c0_6], %17 {strides = array<i32>} : memref<1x8xf32, #tpu.memory_space<vmem>>, vector<1x8xf32>,
    return
  }
  func.func @transform_0(%arg0: i32) -> (i32, i32) {
    %c0_i32 = arith.constant 0 : i32
    %c0_i32_0 = arith.constant 0 : i32
    return %arg0, %c0_i32 : i32, i32
  }
  func.func @transform_1(%arg0: i32) -> (i32, i32) {
    %c0_i32 = arith.constant 0 : i32
    %c0_i32_0 = arith.constant 0 : i32
    return %c0_i32, %arg0 : i32, i32
  }
}

</mosaic_0001>

<bundles_post_ra>
// kernel: tpu_custom_call.1
= control target key start
LH: loop header
LB: loop body
LE: loop exit
PB: predicated region body
PF: predicated region fallthrough
CT: control target
= control target key end

     0   :  { %6 = vsyncpa [#allocation3], 0  ;;  %s170_s0 = inlined_call_operand.hbm [shape: f32[8,32], index: 0, kind: input, shape index: {}]   ;;  %s171_s1 = inlined_call_operand.hbm [shape: f32[1,8], index: 1, kind: output, shape index: {}]  }
   0x1   :  { %7 = vsyncpa [#allocation4], 0  ;;  %s13_s8 = sshll.u32 %s170_s0, 4  ;;  %s151_s9 = smov [#allocation2]   ;;  %s14_s8 = int_to_ptr.hbm [resolvable:$true] %s13_s8 }
   0x2   :  { %s15_s10 = sshll.u32 %s151_s9, 4  ;;  %s16_s10 = int_to_ptr.vmem [resolvable:$true] %s15_s10 }
   0x3   :  { %18 = dma.hbm_to_vmem [thread:$0]  %s14_s8, 128, %s16_s10, [#allocation3]  }
   0x4   :  { %147 = dma.done.wait [#allocation3], 128  }
   0x5   :  { %148 = vsyncadd [#allocation3], 4294967168  ;;  %v23_v0 = vld [vmem:[#allocation2] sm:$0xff]  ;;  %vm29_vm0 = vcmask 130048   ;;  %s152_s11 = smov 112   ;;  %v69_v22 = vlaneseq  ;;  %s153_s0 = smov [#allocation5]  }
   0x6   :  { %v33_v1 = vmul.f32 %v23_v0, %v23_v0  ;;  %s80_s12 = sshll.u32 %s153_s0, 4  ;;  %s82_s15 = sshll.u32 %s171_s1, 4  ;;  %vm73_vm7 = vcmask 57344   ;;  %s81_s12 = int_to_ptr.vmem [resolvable:$true] %s80_s12  ;;  %s83_s15 = int_to_ptr.hbm [resolvable:$true] %s82_s15 }
   0x7   :  { %v70_v27 = vand.u32 127, %v69_v22 }
   0x8   :  { %38 = vrot.lane.b32.xlu0 %v33_v1, %s152_s11  ;;  %v34_v2 = vsel %vm29_vm0, %v33_v1, 0.0 }
   0x9   :  { %35 = vadd.xlane.f32.xlu1 %v34_v2 }
  0x10   :  { %25 = vrot.lane.b32.xlu0 %v23_v0, %s152_s11 }
  0x7a   :  { %v39_v3 = vpop.permute.xlu0 %38 }
  0x7b   :  { %v41_v4 = vsel %vm29_vm0, %v39_v3, 0.0 }
  0x7c   :  { %42 = vadd.xlane.f32.xlu1 %v41_v4  ;;  %v36_v8 = vpop.xlane.xlu1 %35 }
  0x7d   :  { %v44_v9 = vmax.f32 %v36_v8, 1e-16 }
  0x7f   :  { %95 = vrsqrt.f32 %v44_v9  ;;  %vm51_vm1 = vweird.f32 %v44_v9 }
  0x82   :  { %v26_v5 = vpop.permute.xlu0 %25 }
  0x83   :  { %v28_v6 = vmul.f32 %v26_v5, %v23_v0 }
  0x85   :  { %v30_v7 = vsel %vm29_vm0, %v28_v6, 0.0  ;;  %v96_v10 = vpop.eup %95 }
  0x86   :  { %31 = vadd.xlane.f32.xlu2 %v30_v7  ;;  %v46_v11 = vmul.f32 %v96_v10, %v44_v9  ;;  %vm52_vm2 = vweird.f32 %v96_v10 }
  0x87   :  { %vm53_vm3 = vmor %vm51_vm1, %vm52_vm2 }
  0x88   :  { %v47_v14 = vmul.f32 %v96_v10, %v46_v11 }
  0x8a   :  { %v48_v15 = vmul.f32 0.5, %v47_v14 }
  0x8c   :  { %v49_v18 = vsub.f32 1.5, %v48_v15 }
  0x8e   :  { %v50_v21 = vmul.f32 %v96_v10, %v49_v18 }
  0x90   :  { %v54_v25 = vsel %vm53_vm3, %v96_v10, %v50_v21 }
  0xef   :  { %v43_v12 = vpop.xlane.xlu1 %42 }
  0xf0   :  { %v56_v13 = vmax.f32 %v43_v12, 1e-16 }
  0xf2   :  { %97 = vrsqrt.f32 %v56_v13  ;;  %vm63_vm5 = vweird.f32 %v56_v13 }
  0xf8   :  { %v98_v16 = vpop.eup %97 }
  0xf9   :  { %v58_v17 = vmul.f32 %v98_v16, %v56_v13  ;;  %vm64_vm4 = vweird.f32 %v98_v16  ;;  %v32_v24 = vpop.xlane.xlu2 %31 }
  0xfa   :  { %vm65_vm6 = vmor %vm63_vm5, %vm64_vm4  ;;  %v55_v28 = vmul.f32 %v54_v25, %v32_v24 }
  0xfb   :  { %v59_v19 = vmul.f32 %v98_v16, %v58_v17 }
  0xfd   :  { %v60_v20 = vmul.f32 0.5, %v59_v19 }
  0xff   :  { %v61_v23 = vsub.f32 1.5, %v60_v20 }
 0x101   :  { %v62_v26 = vmul.f32 %v98_v16, %v61_v23 }
 0x103   :  { %v66_v29 = vsel %vm65_vm6, %v98_v16, %v62_v26 }
 0x104   :  { %v67_v30 = vmul.f32 %v66_v29, %v55_v28 }
 0x106   :  { %v71_v31 = vperm.slane %v67_v30, %v70_v27 }
 0x108   :  { %74 = vst.msk [vmem:[#allocation5] sm:$0x1] %vm73_vm7, %v71_v31 }
 0x109   :  { %85 = dma.vmem_to_hbm [thread:$0]  %s81_s12, 16, %s83_s15, [#allocation4]  }
 0x10a   :  { %149 = dma.done.wait [#allocation4], 16  }
 0x10b   :  { %150 = vsyncadd [#allocation4], 4294967280 }
 0x10c   :  { %90 = vsyncpa [#allocation3], 1 }
 0x10d   :  { %91 = vsyncpa [#allocation4], 1 }

</bundles_post_ra>
